<compile_context>
chip_gen: v6e
topology: v6e:2x2x1
jax: 0.10.0
libtpu: 0.0.40
codegen_flags: <defaults>
</compile_context>

<pallas_src>
import jax
import jax.numpy as jnp
from jax.experimental import pallas as pl
from jax.experimental.pallas import tpu as pltpu


# ------------------------------- kernel ------------------------------------ #

def _prompt_concat_kernel(prompt_ref, x_hbm, o_hbm, pbuf, sem):
    """One grid step handles `bb` batch rows.

    prompt_ref : VMEM (P, D)       selected prompt row (resident across steps)
    x_hbm      : ANY  (B, N, D)    input tokens, left in HBM
    o_hbm      : ANY  (B, P+N, D)  output, written only via DMA
    pbuf       : VMEM (bb, P, D)   broadcast-prompt staging buffer
    sem        : DMA semaphores, shape (2,)
    """
    bb, p, d = pbuf.shape
    n = x_hbm.shape[1]
    b0 = pl.multiple_of(pl.program_id(0) * bb, bb)

    # 1) Bulk token copy: strided HBM -> HBM DMA; never touches VMEM / vregs.
    cp_x = pltpu.make_async_copy(
        x_hbm.at[pl.ds(b0, bb)],                        # (bb, N, D)
        o_hbm.at[pl.ds(b0, bb), pl.ds(p, n), :],        # out[b0:b0+bb, P:, :]
        sem.at[0])
    cp_x.start()

    # 2) Prompt region: broadcast the (P, D) row across the batch block in
    #    VMEM (tiny; hidden behind the in-flight DMA above), then one strided
    #    VMEM -> HBM DMA into out[b0:b0+bb, :P, :].
    pbuf[...] = jnp.broadcast_to(prompt_ref[...], (bb, p, d))
    cp_p = pltpu.make_async_copy(
        pbuf,
        o_hbm.at[pl.ds(b0, bb), pl.ds(0, p), :],
        sem.at[1])
    cp_p.start()

    cp_x.wait()
    cp_p.wait()


# ------------------------------- wrapper ------------------------------------ #

def _pick_batch_block(batch, n, d, itemsize, prompt_length,
                      target_step_bytes, pbuf_budget_bytes):
    """Batch rows per grid step.

    x never enters VMEM, so the only VMEM constraint is the (bb, P, D)
    broadcast-prompt staging buffer.  Otherwise the block is sized for DMA
    efficiency: the smallest divisor of `batch` whose x-slice meets the
    per-step bandwidth target (more steps -> better megacore sharding on
    v7x), or the whole batch if nothing reaches the target (fewest
    overhead-bound steps).
    """
    row_x_bytes = n * d * itemsize
    prompt_row_bytes = prompt_length * d * itemsize
    divisors = [dd for dd in range(1, batch + 1) if batch % dd == 0]
    divisors = [dd for dd in divisors
                if dd * prompt_row_bytes <= pbuf_budget_bytes] or [1]
    good = [dd for dd in divisors if dd * row_x_bytes >= target_step_bytes]
    return min(good) if good else max(divisors)


def prompt_embedding_forward(prompt_embeddings, x, layer_idx, *,
                             target_step_bytes=4 << 20,
                             pbuf_budget_bytes=8 << 20,
                             xla_fallback_bytes=0):
    """JAX/Pallas equivalent of PromptEmbedding.forward(x, layer_idx).

    prompt_embeddings: (prompt_depth, prompt_length, D)
    x:                 (B, N, D)
    layer_idx:         static Python int -- it decides which branch is taken
                       and hence the output *shape*, so it cannot be traced.
    """
    prompt_depth, prompt_length, d_p = prompt_embeddings.shape
    b, n, d = x.shape
    assert d == d_p, (d, d_p)
    layer_idx = int(layer_idx)   # must be static; raises if a tracer is passed

    if layer_idx >= prompt_depth:          # reference branch not taken
        return x

    # Zero-cost static slice; cast so every write matches the output dtype.
    prompt = prompt_embeddings[layer_idx].astype(x.dtype)     # (P, D)
    n_out = prompt_length + n
    itemsize = jnp.dtype(x.dtype).itemsize

    # Sub-32-bit dtypes pack 2/4 rows per 32-bit word along the second-minor
    # (token) axis; a prompt length that splits a packed word at the P
    # boundary would make the two destination DMAs touch the same word.
    packing = max(1, 4 // itemsize)
    tiny = 0 < xla_fallback_bytes and x.size * itemsize < xla_fallback_bytes
    if prompt_length % packing != 0 or tiny:
        # TODO(synk): pad prompt_length to the dtype's packed-sublane multiple
        # (or fuse the prepend into the consumer kernel) instead of falling back.
        return jnp.concatenate(
            [jnp.broadcast_to(prompt[None], (b, prompt_length, d)), x], axis=1)

    bb = _pick_batch_block(b, n, d, itemsize, prompt_length,
                           target_step_bytes, pbuf_budget_bytes)
    grid = (b // bb,)

    # VMEM footprint: resident prompt block (double-buffered) + staging buffer.
    prompt_bytes = prompt_length * d * itemsize
    pbuf_bytes = bb * prompt_length * d * itemsize
    vmem_limit = int(min(32 << 20,
                         max(8 << 20, 4 * (pbuf_bytes + 2 * prompt_bytes))))

    grid_spec = pltpu.PrefetchScalarGridSpec(
        num_scalar_prefetch=0,
        grid=grid,
        in_specs=[
            # Selected prompt row: full-extent VMEM block, constant index_map
            # -> DMA'd once and resident across all grid steps.
            pl.BlockSpec((prompt_length, d), lambda i: (0, 0)),
            # x stays in HBM; the kernel DMAs it straight into the output.
            pl.BlockSpec(memory_space=pl.ANY),
        ],
        out_specs=pl.BlockSpec(memory_space=pl.ANY),
        scratch_shapes=[
            pltpu.VMEM((bb, prompt_length, d), x.dtype),
            pltpu.SemaphoreType.DMA((2,)),
        ],
    )

    return pl.pallas_call(
        _prompt_concat_kernel,
        out_shape=jax.ShapeDtypeStruct((b, n_out, d), x.dtype),
        grid_spec=grid_spec,
        compiler_params=pltpu.CompilerParams(
            dimension_semantics=("parallel",),
            vmem_limit_bytes=vmem_limit,
        ),
    )(prompt, x)


# --------------------------------- main ------------------------------------- #

if __name__ == "__main__":
    key = jax.random.PRNGKey(0)
    k1, k2, k3, k4 = jax.random.split(key, 4)

    # --- config 1: small shapes implied by the module ------------------------
    B, N, D = 4, 16, 128
    P, DEPTH = 8, 3
    layer_idx = 1
    prompt_embeddings = jax.random.normal(k1, (DEPTH, P, D), jnp.float32)
    x = jax.random.normal(k2, (B, N, D), jnp.float32)

    out = jax.block_until_ready(
        prompt_embedding_forward(prompt_embeddings, x, layer_idx))
    assert out.shape == (B, P + N, D), out.shape
    ref = jnp.concatenate(
        [jnp.broadcast_to(prompt_embeddings[layer_idx][None], (B, P, D)), x],
        axis=1)
    assert bool(jnp.array_equal(out, ref))

    # layer_idx >= prompt_depth -> branch not taken -> identity.
    same = jax.block_until_ready(
        prompt_embedding_forward(prompt_embeddings, x, DEPTH))
    assert same.shape == x.shape and bool(jnp.array_equal(same, x))

    # --- config 2: multi-step "parallel" batch grid (per-step DMA path) ------
    B2, N2 = 8, 128
    prompt2 = jax.random.normal(k3, (DEPTH, P, D), jnp.float32)
    x2 = jax.random.normal(k4, (B2, N2, D), jnp.float32)
    out2 = jax.block_until_ready(
        prompt_embedding_forward(prompt2, x2, 0, target_step_bytes=128 << 10))
    ref2 = jnp.concatenate(
        [jnp.broadcast_to(prompt2[0][None], (B2, P, D)), x2], axis=1)
    assert out2.shape == (B2, P + N2, D), out2.shape
    assert bool(jnp.array_equal(out2, ref2))

    print("KERNEL_OK")
</pallas_src>

<mosaic_0001>
module attributes {stable_mosaic.version = 11 : i64} {
  func.func @_prompt_concat_kernel(%arg0: i32, %arg1: memref<8x128xf32, #tpu.memory_space<vmem>>, %arg2: memref<4x16x128xf32, #tpu.memory_space<any>>, %arg3: memref<4x24x128xf32, #tpu.memory_space<any>>, %arg4: memref<4x8x128xf32, #tpu.memory_space<vmem>>, %arg5: memref<2x!tpu.dma_semaphore, #tpu.memory_space<semaphore_mem>>) attributes {dimension_semantics = [#tpu.dimension_semantics<parallel>], iteration_bounds = array<i64: 1>, scalar_prefetch = 0 : i64, scratch_operands = 2 : i64, tpu.core_type = #tpu.core_type<tc>, window_params = [{pipeline_mode = #tpu.pipeline_mode<synchronous>, transform_indices = @transform_0, window_bounds = array<i64: 8, 128>}, {}, {}]} {
    %c4_i32 = arith.constant 4 : i32
    %0 = arith.muli %arg0, %c4_i32 : i32
    %1 = tpu.assume_multiple %0, 4 : i32
    %c0_i32 = arith.constant 0 : i32
    %c0_i32_0 = arith.constant 0 : i32
    %c0_i32_1 = arith.constant 0 : i32
    %2 = tpu.memref_slice %arg2[%1, %c0_i32_0, %c0_i32_1] : memref<4x16x128xf32, #tpu.memory_space<any>> -> memref<4x16x128xf32, #tpu.memory_space<any>>
    %c8_i32 = arith.constant 8 : i32
    %c0_i32_2 = arith.constant 0 : i32
    %3 = tpu.memref_slice %arg3[%1, %c8_i32, %c0_i32_2] : memref<4x24x128xf32, #tpu.memory_space<any>> -> memref<4x16x128xf32, #tpu.memory_space<any>>
    %4 = tpu.memref_slice %arg5[%c0_i32] : memref<2x!tpu.dma_semaphore, #tpu.memory_space<semaphore_mem>> -> memref<1x!tpu.dma_semaphore, #tpu.memory_space<semaphore_mem>>
    %5 = tpu.memref_squeeze %4 : memref<1x!tpu.dma_semaphore, #tpu.memory_space<semaphore_mem>> -> memref<!tpu.dma_semaphore, #tpu.memory_space<semaphore_mem>>
    tpu.enqueue_dma source(%2 : memref<4x16x128xf32, #tpu.memory_space<any>>) target(%3 : memref<4x16x128xf32, #tpu.memory_space<any>>) target_semaphore(%5 : memref<!tpu.dma_semaphore, #tpu.memory_space<semaphore_mem>>)
    %c0 = arith.constant 0 : index
    %c0_3 = arith.constant 0 : index
    %6 = vector.load %arg1[%c0, %c0_3] : memref<8x128xf32, #tpu.memory_space<vmem>>, vector<8x128xf32>
    %7 = vector.shape_cast %6 : vector<8x128xf32> to vector<1x8x128xf32>
    %8 = vector.broadcast %7 : vector<1x8x128xf32> to vector<4x8x128xf32>
    %c0_4 = arith.constant 0 : index
    %c0_5 = arith.constant 0 : index
    %c0_6 = arith.constant 0 : index
    %9 = vector.load %arg4[%c0_4, %c0_5, %c0_6] : memref<4x8x128xf32, #tpu.memory_space<vmem>>, vector<4x8x128xf32>
    tpu.vector_store %arg4[%c0_4, %c0_5, %c0_6], %8 {strides = array<i32>} : memref<4x8x128xf32, #tpu.memory_space<vmem>>, vector<4x8x128xf32>,
    %c1_i32 = arith.constant 1 : i32
    %c0_i32_7 = arith.constant 0 : i32
    %c0_i32_8 = arith.constant 0 : i32
    %10 = tpu.memref_slice %arg3[%1, %c0_i32_7, %c0_i32_8] : memref<4x24x128xf32, #tpu.memory_space<any>> -> memref<4x8x128xf32, #tpu.memory_space<any>>
    %11 = tpu.memref_slice %arg5[%c1_i32] : memref<2x!tpu.dma_semaphore, #tpu.memory_space<semaphore_mem>> -> memref<1x!tpu.dma_semaphore, #tpu.memory_space<semaphore_mem>>
    %12 = tpu.memref_squeeze %11 : memref<1x!tpu.dma_semaphore, #tpu.memory_space<semaphore_mem>> -> memref<!tpu.dma_semaphore, #tpu.memory_space<semaphore_mem>>
    tpu.enqueue_dma source(%arg4 : memref<4x8x128xf32, #tpu.memory_space<vmem>>) target(%10 : memref<4x8x128xf32, #tpu.memory_space<any>>) target_semaphore(%12 : memref<!tpu.dma_semaphore, #tpu.memory_space<semaphore_mem>>)
    %c0_i32_9 = arith.constant 0 : i32
    %c0_i32_10 = arith.constant 0 : i32
    %c0_i32_11 = arith.constant 0 : i32
    %13 = tpu.memref_slice %arg2[%1, %c0_i32_10, %c0_i32_11] : memref<4x16x128xf32, #tpu.memory_space<any>> -> memref<4x16x128xf32, #tpu.memory_space<any>>
    %c8_i32_12 = arith.constant 8 : i32
    %c0_i32_13 = arith.constant 0 : i32
    %14 = tpu.memref_slice %arg3[%1, %c8_i32_12, %c0_i32_13] : memref<4x24x128xf32, #tpu.memory_space<any>> -> memref<4x16x128xf32, #tpu.memory_space<any>>
    %15 = tpu.memref_slice %arg5[%c0_i32_9] : memref<2x!tpu.dma_semaphore, #tpu.memory_space<semaphore_mem>> -> memref<1x!tpu.dma_semaphore, #tpu.memory_space<semaphore_mem>>
    %16 = tpu.memref_squeeze %15 : memref<1x!tpu.dma_semaphore, #tpu.memory_space<semaphore_mem>> -> memref<!tpu.dma_semaphore, #tpu.memory_space<semaphore_mem>>
    tpu.wait_dma2 semaphore(%16 : memref<!tpu.dma_semaphore, #tpu.memory_space<semaphore_mem>>) src(%13 : memref<4x16x128xf32, #tpu.memory_space<any>>) dst(%14 : memref<4x16x128xf32, #tpu.memory_space<any>>)
    %c1_i32_14 = arith.constant 1 : i32
    %c0_i32_15 = arith.constant 0 : i32
    %c0_i32_16 = arith.constant 0 : i32
    %17 = tpu.memref_slice %arg3[%1, %c0_i32_15, %c0_i32_16] : memref<4x24x128xf32, #tpu.memory_space<any>> -> memref<4x8x128xf32, #tpu.memory_space<any>>
    %18 = tpu.memref_slice %arg5[%c1_i32_14] : memref<2x!tpu.dma_semaphore, #tpu.memory_space<semaphore_mem>> -> memref<1x!tpu.dma_semaphore, #tpu.memory_space<semaphore_mem>>
    %19 = tpu.memref_squeeze %18 : memref<1x!tpu.dma_semaphore, #tpu.memory_space<semaphore_mem>> -> memref<!tpu.dma_semaphore, #tpu.memory_space<semaphore_mem>>
    tpu.wait_dma2 semaphore(%19 : memref<!tpu.dma_semaphore, #tpu.memory_space<semaphore_mem>>) src(%arg4 : memref<4x8x128xf32, #tpu.memory_space<vmem>>) dst(%17 : memref<4x8x128xf32, #tpu.memory_space<any>>)
    return
  }
  func.func @transform_0(%arg0: i32) -> (i32, i32) {
    %c0_i32 = arith.constant 0 : i32
    %c0_i32_0 = arith.constant 0 : i32
    %c0_i32_1 = arith.constant 0 : i32
    return %c0_i32, %c0_i32_0 : i32, i32
  }
}

</mosaic_0001>

<bundles_post_ra>
// kernel: tpu_custom_call.1
= control target key start
LH: loop header
LB: loop body
LE: loop exit
PB: predicated region body
PF: predicated region fallthrough
CT: control target
= control target key end

     0   :  { %7 = vsyncpa [#allocation5], 0  ;;  %s136_s9 = smov [#allocation4]   ;;  %s175_s0 = inlined_call_operand.hbm [shape: f32[8,128], index: 0, kind: input, shape index: {}]   ;;  %s176_s1 = inlined_call_operand.hbm [shape: f32[4,16,128], index: 1, kind: input, shape index: {}]   ;;  %s177_s2 = inlined_call_operand.hbm [shape: f32[4,24,128], index: 2, kind: output, shape index: {}]  }
   0x1   :  { %s14_s10 = sshll.u32 %s136_s9, 4  ;;  %s15_s10 = int_to_ptr.vmem [resolvable:$true] %s14_s10 }
   0x2   :  { %s98_s11 = scalar_lea.vmem %s15_s10, 128  ;;  %p103_p1 = scmp.lt.s32.totalorder %s15_s10, %s15_s10 }
   0x3   :  { %p99_p0 = scmp.ne.s32.totalorder %s15_s10, %s98_s11  ;;  %p104_p2 = scmp.lt.s32.totalorder %s98_s11, %s98_s11 }
   0x5   :  { %p105_p3 = por %p104_p2, %p103_p1 }
   0x7   :  { %p106_p4 = pnand %p105_p3, %p99_p0 }
   0x9   :  { %109 = shalt.err (!%p106_p4)
}
   0xa   :  { %17 = dma.hbm_to_vmem [thread:$0]  %s175_s0, 128, %s15_s10, [#allocation5]  }
   0xb   :  { %130 = dma.done.wait [#allocation5], 128  }
   0xc   :  { %131 = vsyncadd [#allocation5], 4294967168  ;;  %s137_s14 = smov 256   ;;  %s138_s15 = smov 384  }
   0xd   :  { %35 = sst [smem:[#allocation7]] %s137_s14  ;;  %s77_s18 = scalar_lea.hbm %s177_s2, 128 }
   0xe   :  { %37 = sst [smem:[#allocation7 + $0x1]] %s138_s15  ;;  %s139_s19 = smov 16  }
   0xf   :  { %39 = sst [smem:[#allocation7 + $0x2]] %s139_s19  ;;  %s140_s20 = smov [#allocation3]  }
  0x10   :  { %s141_s21 = smov 131072   ;;  %s142_s22 = smov 0  }
  0x11   :  { %41 = dma.general %s176_s1, 1024, %s77_s18, %s140_s20, %s141_s21, [#allocation7], %s142_s22, 0  }
  0x12   :  { %s143_s0 = smov [#allocation2]   ;;  %v42_v0 = vld [vmem:[#allocation4] sm:$0xff] }
  0x13   :  { %s51_s25 = sshll.u32 %s143_s0, 4  ;;  %43 = vst [vmem:[#allocation2] sm:$0xff] %v42_v0  ;;  %44 = vst [vmem:[#allocation2 + $0x8] sm:$0xff] %v42_v0  ;;  %s52_s25 = int_to_ptr.vmem [resolvable:$true] %s51_s25 }
  0x14   :  { %45 = vst [vmem:[#allocation2 + $0x10] sm:$0xff] %v42_v0  ;;  %46 = vst [vmem:[#allocation2 + $0x18] sm:$0xff] %v42_v0  ;;  %s110_s26 = scalar_lea.vmem %s52_s25, 512  ;;  %p115_p6 = scmp.lt.s32.totalorder %s52_s25, %s52_s25 }
  0x15   :  { %p111_p5 = scmp.ne.s32.totalorder %s52_s25, %s110_s26  ;;  %p116_p7 = scmp.lt.s32.totalorder %s110_s26, %s110_s26 }
  0x17   :  { %p117_p8 = por %p116_p7, %p115_p6 }
  0x19   :  { %p118_p9 = pnand %p117_p8, %p111_p5 }
  0x1b   :  { %121 = shalt.err (!%p118_p9)  }
  0x1c   :  { %s144_s27 = smov 128   ;;  %s145_s28 = smov 8  }
  0x1d   :  { %54 = dma.vmem_to_hbm [thread:$0]  %s52_s25, 512, %s177_s2, [#allocation3 + $0x1], %s144_s27, %s138_s15, %s145_s28 }
  0x1e   :  { %132 = dma.done.wait [#allocation3], 1024 }
  0x1f   :  { %133 = vsyncadd [#allocation3], 4294966272 }
  0x20   :  { %134 = dma.done.wait [#allocation3 + $0x1], 512 }
  0x21   :  { %135 = vsyncadd [#allocation3 + $0x1], 4294966784 }
  0x22   :  { %63 = vsyncpa [#allocation5], 1 }
  0x23   :  { %64 = vsyncmov [#allocation3] }
  0x26   :  { %s65_s30 = vpop.sfrf %64 }
  0x27   :  { %p78_p10 = scmp.ne.s32.totalorder %s65_s30, 0 }
  0x29   :  { %69 = shalt.err (%p78_p10)  }
  0x2a   :  { %71 = vsyncmov [#allocation3 + $0x1] }
  0x2d   :  { %s72_s3 = vpop.sfrf %71 }
  0x2e   :  { %p79_p11 = scmp.ne.s32.totalorder %s72_s3, 0 }
  0x30   :  { %76 = shalt.err (%p79_p11)  }

</bundles_post_ra>
